<compile_context>
chip_gen: v6e
topology: v6e:2x2x1
jax: 0.10.0
libtpu: 0.0.40
codegen_flags: <defaults>
</compile_context>

<pallas_src>
import functools
import math

import jax
import jax.numpy as jnp
from jax.experimental import pallas as pl
from jax.experimental.pallas import tpu as pltpu

_GELU_C = math.sqrt(2.0 / math.pi)
_MIB = 1024 * 1024


def _round_up(x, m):
    return (x + m - 1) // m * m


def _gelu_new(x):
    # 0.5 * x * (1 + tanh(sqrt(2/pi) * (x + 0.044715 * x^3)))
    return 0.5 * x * (1.0 + jnp.tanh(_GELU_C * (x + 0.044715 * x * x * x)))


def _vmem_capacity_bytes():
    try:
        return int(pltpu.get_tpu_info().vmem_capacity_bytes)
    except Exception:
        return 64 * _MIB  # conservative: v7x per-TensorCore VMEM


def _default_gelu_dtype():
    # v5e and older chips have no bf16 VPU/EUP -> keep GeLU math in f32 there.
    try:
        kind = jax.devices()[0].device_kind.lower()
    except Exception:
        return jnp.float32
    if any(tag in kind for tag in ("v2", "v3", "v4", "v5")):
        return jnp.float32
    return jnp.bfloat16


# ----------------------------- kernels ---------------------------------------
def _mlp_resident_kernel(x_ref, w_in_ref, b_in_ref, w_out_ref, b_out_ref,
                         o_ref, *, gelu_dtype):
    """Whole MLP for one row tile; weights stay VMEM-resident (constant index)."""
    pre = (
        jnp.dot(x_ref[...], w_in_ref[...], preferred_element_type=jnp.float32)
        + b_in_ref[...]
    )
    act = _gelu_new(pre.astype(gelu_dtype))
    o_ref[...] = (
        jnp.dot(act.astype(w_out_ref.dtype), w_out_ref[...],
                preferred_element_type=jnp.float32)
        + b_out_ref[...]
    )


def _mlp_tiled_kernel(x_ref, w_in_ref, b_in_ref, w_out_ref, b_out_ref,
                      o_ref, *, gelu_dtype):
    """Hidden-tiled path: accumulate over h directly into the resident output."""
    h = pl.program_id(1)

    @pl.when(h == 0)
    def _():
        # Output tile is resident across the h axis; seed it with b_out.
        o_ref[...] = jnp.broadcast_to(b_out_ref[...], o_ref.shape)

    pre = (
        jnp.dot(x_ref[...], w_in_ref[...], preferred_element_type=jnp.float32)
        + b_in_ref[...]
    )
    act = _gelu_new(pre.astype(gelu_dtype))
    o_ref[...] += jnp.dot(act.astype(w_out_ref.dtype), w_out_ref[...],
                          preferred_element_type=jnp.float32)


# ----------------------------- wrapper ----------------------------------------
def mlp_forward(x, w_in, b_in, w_out, b_out, *, tm=512,
                compute_dtype=jnp.bfloat16):
    """x: [batch, posn, d_model] float32 -> [batch, posn, d_model] float32."""
    batch, posn, d_model = x.shape
    d_mlp = w_in.shape[1]
    rows = batch * posn

    bpe = jnp.dtype(compute_dtype).itemsize
    gelu_dtype = (jnp.float32
                  if jnp.dtype(compute_dtype) == jnp.dtype(jnp.float32)
                  else _default_gelu_dtype())
    gelu_bpe = jnp.dtype(gelu_dtype).itemsize

    vmem_cap = _vmem_capacity_bytes()
    vmem_budget = int(0.8 * vmem_cap)       # headroom for compiler scratch

    # --- row tile -------------------------------------------------------------
    rows16 = _round_up(rows, 16)            # bf16 packs 16 rows per vreg group
    tm = min(tm, rows16)
    # v7x has 2 TensorCores and the row axis is "parallel": keep >= 2 row tiles
    # on small inputs so the second core isn't idle.
    if rows16 // tm < 2 and tm >= 32:
        tm = _round_up(tm // 2, 16)

    d_model_p = _round_up(d_model, 128)     # lane-dense output slab
    d_mlp_128 = _round_up(d_mlp, 128)

    # --- path selection: can both (bf16) weights live in VMEM? -----------------
    def _resident_bytes(tm_):
        return (
            2 * tm_ * d_model_p * bpe            # x tile (double-buffered)
            + 2 * tm_ * d_model_p * 4            # f32 output tile
            + 2 * d_model_p * d_mlp_128 * bpe    # W_in  (2 bufs, filled once)
            + 2 * d_mlp_128 * d_model_p * bpe    # W_out (2 bufs, filled once)
            + 2 * 8 * d_mlp_128 * 4              # b_in  (sublane padded)
            + 2 * 8 * d_model_p * 4              # b_out
            + tm_ * d_mlp_128 * 4                # f32 'pre' intermediate
            + tm_ * d_mlp_128 * gelu_bpe         # gelu intermediate
        )

    use_resident = _resident_bytes(tm) <= vmem_budget

    if use_resident:
        th = None
        d_mlp_p = d_mlp_128
        est_bytes = _resident_bytes(tm)
    else:
        # Hidden-tiled fallback: th always >= 512 (padding absorbs remainders).
        th = 1024 if d_mlp % 1024 == 0 else 512
        th = min(th, d_mlp_128)
        d_mlp_p = _round_up(d_mlp, th)

        def _tiled_bytes(tm_):
            return (
                2 * tm_ * d_model_p * bpe        # x tile
                + 2 * d_model_p * th * bpe       # W_in slice
                + 2 * th * d_model_p * bpe       # W_out slice
                + 2 * 8 * th * 4                 # b_in slice
                + 2 * 8 * d_model_p * 4          # b_out
                + 2 * tm_ * d_model_p * 4        # resident f32 output tile
                + tm_ * th * 4                   # f32 'pre' intermediate
                + tm_ * th * gelu_bpe            # gelu intermediate
            )

        # TODO(synk): for very large d_model (>= ~4096 on v7x) add a K-tile over
        # the d_model contraction instead of shrinking tm (tm shrink re-inflates
        # weight traffic); tm shrink kept here as the simple safe fallback.
        while _tiled_bytes(tm) > vmem_budget and tm > 64:
            tm = max(64, _round_up(tm // 2, 16))
        est_bytes = _tiled_bytes(tm)

    rows_p = _round_up(rows, tm)

    # --- pad + cast operands (zero padding is numerically inert:
    #     gelu(0) = 0 and padded W_out rows are zero) ----------------------------
    x2d = x.reshape(rows, d_model).astype(compute_dtype)
    if (rows_p, d_model_p) != (rows, d_model):
        x2d = jnp.pad(x2d, ((0, rows_p - rows), (0, d_model_p - d_model)))

    w_in_c = w_in.astype(compute_dtype)
    if (d_model_p, d_mlp_p) != (d_model, d_mlp):
        w_in_c = jnp.pad(w_in_c, ((0, d_model_p - d_model), (0, d_mlp_p - d_mlp)))

    w_out_c = w_out.astype(compute_dtype)
    if (d_mlp_p, d_model_p) != (d_mlp, d_model):
        w_out_c = jnp.pad(w_out_c, ((0, d_mlp_p - d_mlp), (0, d_model_p - d_model)))

    b_in2d = b_in.astype(jnp.float32).reshape(1, d_mlp)
    if d_mlp_p != d_mlp:
        b_in2d = jnp.pad(b_in2d, ((0, 0), (0, d_mlp_p - d_mlp)))

    b_out2d = b_out.astype(jnp.float32).reshape(1, d_model)
    if d_model_p != d_model:
        b_out2d = jnp.pad(b_out2d, ((0, 0), (0, d_model_p - d_model)))

    vmem_limit = int(min(max(int(est_bytes * 1.5), 32 * _MIB),
                         vmem_cap - 8 * _MIB))

    if use_resident:
        grid = (rows_p // tm,)
        kernel = functools.partial(_mlp_resident_kernel, gelu_dtype=gelu_dtype)
        in_specs = [
            pl.BlockSpec((tm, d_model_p), lambda i: (i, 0)),        # x rows
            pl.BlockSpec((d_model_p, d_mlp_p), lambda i: (0, 0)),   # W_in (resident)
            pl.BlockSpec((1, d_mlp_p), lambda i: (0, 0)),           # b_in
            pl.BlockSpec((d_mlp_p, d_model_p), lambda i: (0, 0)),   # W_out (resident)
            pl.BlockSpec((1, d_model_p), lambda i: (0, 0)),         # b_out
        ]
        out_specs = pl.BlockSpec((tm, d_model_p), lambda i: (i, 0))
        dim_sem = ("parallel",)
    else:
        grid = (rows_p // tm, d_mlp_p // th)
        kernel = functools.partial(_mlp_tiled_kernel, gelu_dtype=gelu_dtype)
        # TODO(synk): pre-tile W_in to (n_h, d_model_p, th) in the wrapper so each
        # h-slice is a contiguous DMA (matters most on v5e HBM bandwidth).
        in_specs = [
            pl.BlockSpec((tm, d_model_p), lambda i, h: (i, 0)),     # x rows
            pl.BlockSpec((d_model_p, th), lambda i, h: (0, h)),     # W_in slice
            pl.BlockSpec((1, th), lambda i, h: (0, h)),             # b_in slice
            pl.BlockSpec((th, d_model_p), lambda i, h: (h, 0)),     # W_out slice
            pl.BlockSpec((1, d_model_p), lambda i, h: (0, 0)),      # b_out
        ]
        out_specs = pl.BlockSpec((tm, d_model_p), lambda i, h: (i, 0))
        dim_sem = ("parallel", "arbitrary")

    out2d = pl.pallas_call(
        kernel,
        out_shape=jax.ShapeDtypeStruct((rows_p, d_model_p), jnp.float32),
        grid_spec=pltpu.PrefetchScalarGridSpec(
            num_scalar_prefetch=0,
            grid=grid,
            in_specs=in_specs,
            out_specs=out_specs,
        ),
        compiler_params=pltpu.CompilerParams(
            dimension_semantics=dim_sem,
            vmem_limit_bytes=vmem_limit,
        ),
    )(x2d, w_in_c, b_in2d, w_out_c, b_out2d)

    out2d = out2d[:rows, :d_model]
    return out2d.reshape(batch, posn, d_model).astype(x.dtype)


# ------------------------------- reference ------------------------------------
def _gelu_new_ref(x):
    return 0.5 * x * (1.0 + jnp.tanh(_GELU_C * (x + 0.044715 * x**3)))


def _mlp_ref(x, w_in, b_in, w_out, b_out):
    pre = jnp.einsum("bpd,dm->bpm", x, w_in) + b_in
    act = _gelu_new_ref(pre)
    return jnp.einsum("bpm,md->bpd", act, w_out) + b_out


if __name__ == "__main__":
    # Small synthetic config (same structure as the PyTorch Config, shrunk).
    batch, posn = 2, 8
    d_model, d_mlp = 128, 256
    init_range = 0.02

    key = jax.random.PRNGKey(0)
    k_x, k_win, k_wout = jax.random.split(key, 3)

    x = jax.random.normal(k_x, (batch, posn, d_model), dtype=jnp.float32)
    w_in = init_range * jax.random.normal(k_win, (d_model, d_mlp), dtype=jnp.float32)
    w_out = init_range * jax.random.normal(k_wout, (d_mlp, d_model), dtype=jnp.float32)
    b_in = jnp.zeros((d_mlp,), dtype=jnp.float32)
    b_out = jnp.zeros((d_model,), dtype=jnp.float32)

    out = mlp_forward(x, w_in, b_in, w_out, b_out)
    out = jax.block_until_ready(out)

    ref = _mlp_ref(x, w_in, b_in, w_out, b_out)
    assert out.shape == (batch, posn, d_model)
    # bf16 matmul inputs (and possibly bf16 GeLU) with f32 accumulation ->
    # loosened tolerance vs the f32 reference.
    assert jnp.allclose(out, ref, atol=1e-2, rtol=1e-2), "mismatch vs reference"

    print("KERNEL_OK")
</pallas_src>

<mosaic_0001>
module attributes {stable_mosaic.version = 11 : i64} {
  func.func @_mlp_resident_kernel(%arg0: i32, %arg1: memref<16x128xbf16, #tpu.memory_space<vmem>>, %arg2: memref<128x256xbf16, #tpu.memory_space<vmem>>, %arg3: memref<1x256xf32, #tpu.memory_space<vmem>>, %arg4: memref<256x128xbf16, #tpu.memory_space<vmem>>, %arg5: memref<1x128xf32, #tpu.memory_space<vmem>>, %arg6: memref<16x128xf32, #tpu.memory_space<vmem>>) attributes {dimension_semantics = [#tpu.dimension_semantics<parallel>], iteration_bounds = array<i64: 1>, scalar_prefetch = 0 : i64, scratch_operands = 0 : i64, tpu.core_type = #tpu.core_type<tc>, window_params = [{transform_indices = @transform_0, window_bounds = array<i64: 16, 128>}, {pipeline_mode = #tpu.pipeline_mode<synchronous>, transform_indices = @transform_1, window_bounds = array<i64: 128, 256>}, {pipeline_mode = #tpu.pipeline_mode<synchronous>, transform_indices = @transform_2, window_bounds = array<i64: 1, 256>}, {pipeline_mode = #tpu.pipeline_mode<synchronous>, transform_indices = @transform_3, window_bounds = array<i64: 256, 128>}, {pipeline_mode = #tpu.pipeline_mode<synchronous>, transform_indices = @transform_4, window_bounds = array<i64: 1, 128>}, {transform_indices = @transform_5, window_bounds = array<i64: 16, 128>}]} {
    %c0 = arith.constant 0 : index
    %c0_0 = arith.constant 0 : index
    %0 = vector.load %arg1[%c0, %c0_0] : memref<16x128xbf16, #tpu.memory_space<vmem>>, vector<16x128xbf16>
    %c0_1 = arith.constant 0 : index
    %c0_2 = arith.constant 0 : index
    %1 = vector.load %arg2[%c0_1, %c0_2] : memref<128x256xbf16, #tpu.memory_space<vmem>>, vector<128x256xbf16>
    %cst = arith.constant dense<0.000000e+00> : vector<16x256xf32>
    %2 = tpu.matmul %0, %1, %cst {dimension_numbers = #tpu.dot_dimension_numbers<[1], [0], [0], [1], [0, 0, 1, 1], [], []>} : vector<16x128xbf16>, vector<128x256xbf16>, vector<16x256xf32> -> vector<16x256xf32>
    %c0_3 = arith.constant 0 : index
    %c0_4 = arith.constant 0 : index
    %3 = vector.load %arg3[%c0_3, %c0_4] : memref<1x256xf32, #tpu.memory_space<vmem>>, vector<1x256xf32>
    %4 = vector.broadcast %3 : vector<1x256xf32> to vector<16x256xf32>
    %5 = arith.addf %2, %4 : vector<16x256xf32>
    %6 = arith.truncf %5 : vector<16x256xf32> to vector<16x256xbf16>
    %cst_5 = arith.constant 5.000000e-01 : bf16
    %7 = vector.broadcast %cst_5 : bf16 to vector<16x256xbf16>
    %8 = arith.mulf %7, %6 : vector<16x256xbf16>
    %cst_6 = arith.constant 4.467770e-02 : bf16
    %9 = vector.broadcast %cst_6 : bf16 to vector<16x256xbf16>
    %10 = arith.mulf %9, %6 : vector<16x256xbf16>
    %11 = arith.mulf %10, %6 : vector<16x256xbf16>
    %12 = arith.mulf %11, %6 : vector<16x256xbf16>
    %13 = arith.addf %6, %12 : vector<16x256xbf16>
    %cst_7 = arith.constant 7.968750e-01 : bf16
    %14 = vector.broadcast %cst_7 : bf16 to vector<16x256xbf16>
    %15 = arith.mulf %14, %13 : vector<16x256xbf16>
    %16 = math.tanh %15 : vector<16x256xbf16>
    %cst_8 = arith.constant 1.000000e+00 : bf16
    %17 = vector.broadcast %cst_8 : bf16 to vector<16x256xbf16>
    %18 = arith.addf %17, %16 : vector<16x256xbf16>
    %19 = arith.mulf %8, %18 : vector<16x256xbf16>
    %c0_9 = arith.constant 0 : index
    %c0_10 = arith.constant 0 : index
    %20 = vector.load %arg4[%c0_9, %c0_10] : memref<256x128xbf16, #tpu.memory_space<vmem>>, vector<256x128xbf16>
    %cst_11 = arith.constant dense<0.000000e+00> : vector<16x128xf32>
    %21 = tpu.matmul %19, %20, %cst_11 {dimension_numbers = #tpu.dot_dimension_numbers<[1], [0], [0], [1], [0, 0, 1, 1], [], []>} : vector<16x256xbf16>, vector<256x128xbf16>, vector<16x128xf32> -> vector<16x128xf32>
    %c0_12 = arith.constant 0 : index
    %c0_13 = arith.constant 0 : index
    %22 = vector.load %arg5[%c0_12, %c0_13] : memref<1x128xf32, #tpu.memory_space<vmem>>, vector<1x128xf32>
    %23 = vector.broadcast %22 : vector<1x128xf32> to vector<16x128xf32>
    %24 = arith.addf %21, %23 : vector<16x128xf32>
    %c0_14 = arith.constant 0 : index
    %c0_15 = arith.constant 0 : index
    %25 = vector.load %arg6[%c0_14, %c0_15] : memref<16x128xf32, #tpu.memory_space<vmem>>, vector<16x128xf32>
    tpu.vector_store %arg6[%c0_14, %c0_15], %24 {strides = array<i32>} : memref<16x128xf32, #tpu.memory_space<vmem>>, vector<16x128xf32>,
    return
  }
  func.func @transform_0(%arg0: i32) -> (i32, i32) {
    %c0_i32 = arith.constant 0 : i32
    %c0_i32_0 = arith.constant 0 : i32
    return %arg0, %c0_i32 : i32, i32
  }
  func.func @transform_1(%arg0: i32) -> (i32, i32) {
    %c0_i32 = arith.constant 0 : i32
    %c0_i32_0 = arith.constant 0 : i32
    %c0_i32_1 = arith.constant 0 : i32
    return %c0_i32, %c0_i32_0 : i32, i32
  }
  func.func @transform_2(%arg0: i32) -> (i32, i32) {
    %c0_i32 = arith.constant 0 : i32
    %c0_i32_0 = arith.constant 0 : i32
    %c0_i32_1 = arith.constant 0 : i32
    return %c0_i32, %c0_i32_0 : i32, i32
  }
  func.func @transform_3(%arg0: i32) -> (i32, i32) {
    %c0_i32 = arith.constant 0 : i32
    %c0_i32_0 = arith.constant 0 : i32
    %c0_i32_1 = arith.constant 0 : i32
    return %c0_i32, %c0_i32_0 : i32, i32
  }
  func.func @transform_4(%arg0: i32) -> (i32, i32) {
    %c0_i32 = arith.constant 0 : i32
    %c0_i32_0 = arith.constant 0 : i32
    %c0_i32_1 = arith.constant 0 : i32
    return %c0_i32, %c0_i32_0 : i32, i32
  }
  func.func @transform_5(%arg0: i32) -> (i32, i32) {
    %c0_i32 = arith.constant 0 : i32
    %c0_i32_0 = arith.constant 0 : i32
    return %arg0, %c0_i32 : i32, i32
  }
}

</mosaic_0001>

<bundles_post_ra>
// kernel: tpu_custom_call.1
= control target key start
LH: loop header
LB: loop body
LE: loop exit
PB: predicated region body
PF: predicated region fallthrough
CT: control target
= control target key end

     0   :  { %10 = vsyncpa [#allocation3], 0  ;;  %s701_s0 = inlined_call_operand.hbm [shape: bf16[16,128], index: 0, kind: input, shape index: {}]   ;;  %s702_s1 = inlined_call_operand.hbm [shape: bf16[128,256], index: 1, kind: input, shape index: {}]   ;;  %s703_s2 = inlined_call_operand.vmem [shape: f32[1,256], index: 2, kind: input, shape index: {}]   ;;  %s704_s3 = inlined_call_operand.hbm [shape: bf16[256,128], index: 3, kind: input, shape index: {}]   ;;  %s705_s4 = inlined_call_operand.vmem [shape: f32[1,128], index: 4, kind: input, shape index: {}]   ;;  %s706_s5 = inlined_call_operand.hbm [shape: f32[16,128], index: 5, kind: output, shape index: {}]  }
   0x1   :  { %11 = vsyncpa [#allocation6], 0 }
   0x2   :  { %12 = vsyncpa [#allocation4], 0  ;;  %s638_s18 = smov [#allocation5]  }
   0x3   :  { %s30_s19 = sshll.u32 %s638_s18, 4  ;;  %s31_s19 = int_to_ptr.vmem [resolvable:$true] %s30_s19 }
   0x4   :  { %s560_s20 = scalar_lea.vmem %s31_s19, 2048  ;;  %p565_p1 = scmp.lt.s32.totalorder %s31_s19, %s31_s19 }
   0x5   :  { %p561_p0 = scmp.ne.s32.totalorder %s31_s19, %s560_s20  ;;  %p566_p2 = scmp.lt.s32.totalorder %s560_s20, %s560_s20 }
   0x7   :  { %p567_p3 = por %p566_p2, %p565_p1 }
   0x9   :  { %p568_p4 = pnand %p567_p3, %p561_p0 }
   0xb   :  { %571 = shalt.err (!%p568_p4)
}
   0xc   :  { %s639_s21 = smov 128   ;;  %s640_s22 = smov 8  }
   0xd   :  { %36 = dma.hbm_to_vmem [thread:$0]  %s702_s1, 2048, %s31_s19, [#allocation6], %s639_s21, %s639_s21, %s640_s22  }
   0xe   :  { %s641_s25 = smov [#allocation2]  }
   0xf   :  { %s18_s26 = sshll.u32 %s641_s25, 4  ;;  %s19_s26 = int_to_ptr.vmem [resolvable:$true] %s18_s26 }
  0x10   :  { %s580_s27 = scalar_lea.vmem %s19_s26, 128  ;;  %p585_p6 = scmp.lt.s32.totalorder %s19_s26, %s19_s26 }
  0x11   :  { %p581_p5 = scmp.ne.s32.totalorder %s19_s26, %s580_s27  ;;  %p586_p7 = scmp.lt.s32.totalorder %s580_s27, %s580_s27 }
  0x13   :  { %p587_p8 = por %p586_p7, %p585_p6 }
  0x15   :  { %p588_p9 = pnand %p587_p8, %p581_p5 }
  0x17   :  { %591 = shalt.err (!%p588_p9)
}
  0x18   :  { %s642_s28 = smov 64   ;;  %s643_s29 = smov 4  }
  0x19   :  { %24 = dma.hbm_to_vmem [thread:$0]  %s701_s0, 128, %s19_s26, [#allocation3], %s642_s28, %s642_s28, %s643_s29  }
  0x1a   :  { %s644_s7 = smov [#allocation7]  }
  0x1b   :  { %s44_s8 = sshll.u32 %s644_s7, 4  ;;  %s45_s8 = int_to_ptr.vmem [resolvable:$true] %s44_s8 }
  0x1c   :  { %s600_s1 = scalar_lea.vmem %s45_s8, 2048  ;;  %p605_p11 = scmp.lt.s32.totalorder %s45_s8, %s45_s8 }
  0x1d   :  { %p601_p10 = scmp.ne.s32.totalorder %s45_s8, %s600_s1  ;;  %p606_p12 = scmp.lt.s32.totalorder %s600_s1, %s600_s1 }
  0x1f   :  { %p607_p13 = por %p606_p12, %p605_p11 }
  0x21   :  { %p608_p0 = pnand %p607_p13, %p601_p10 }
  0x23   :  { %611 = shalt.err (!%p608_p0)
}
  0x24   :  { %50 = dma.hbm_to_vmem [thread:$0]  %s704_s3, 2048, %s45_s8, [#allocation6], %s642_s28, %s642_s28, %s643_s29  }
  0x25   :  { %632 = dma.done.wait [#allocation3], 128  }
  0x26   :  { %633 = vsyncadd [#allocation3], 4294967168 }
  0x27   :  { %634 = dma.done.wait [#allocation6], 4096  }
  0x28   :  { %635 = vsyncadd [#allocation6], 4294963200  ;;  %v645_v0 = vmov 0   ;;  %v507_v1 = vld [vmem:[#allocation5 + $0x74] ss:$8 sps:$4 sm:$0xff]   ;;  %v536_v22 = vld [vmem:[#allocation7 + $0x68] sm:$0xff]   ;;  %v87_v34 = vlaneseq }
  0x29   :  { %215 = vmatprep.mubr.bf16.mxu0 %v645_v0  ;;  %v509_v2 = vld [vmem:[#allocation5 + $0x70] ss:$8 sps:$4 sm:$0xff]   ;;  %183 = vmatprep.subr.bf16.mxu0 %v507_v1  ;;  %v510_v3 = vld [vmem:[#allocation5 + $0x64] ss:$8 sps:$4 sm:$0xff]   ;;  %v512_v4 = vld [vmem:[#allocation5 + $0x60] ss:$8 sps:$4 sm:$0xff]  }
  0x2a   :  { %184 = vmatpush1.bf16.msra.mxu0 %v509_v2  ;;  %v513_v5 = vld [vmem:[#allocation5 + $0x54] ss:$8 sps:$4 sm:$0xff]   ;;  %v515_v6 = vld [vmem:[#allocation5 + $0x50] ss:$8 sps:$4 sm:$0xff]   ;;  %v516_v7 = vld [vmem:[#allocation5 + $0x44] ss:$8 sps:$4 sm:$0xff]  }
  0x2b   :  { %185 = vmatprep.subr.bf16.mxu0 %v510_v3  ;;  %v518_v8 = vld [vmem:[#allocation5 + $0x40] ss:$8 sps:$4 sm:$0xff]   ;;  %v519_v9 = vld [vmem:[#allocation5 + $0x34] ss:$8 sps:$4 sm:$0xff]   ;;  %v521_v10 = vld [vmem:[#allocation5 + $0x30] ss:$8 sps:$4 sm:$0xff]  }
  0x2c   :  { %v522_v11 = vld [vmem:[#allocation5 + $0x24] ss:$8 sps:$4 sm:$0xff]   ;;  %v524_v12 = vld [vmem:[#allocation5 + $0x20] ss:$8 sps:$4 sm:$0xff]   ;;  %v525_v13 = vld [vmem:[#allocation5 + $0x14] ss:$8 sps:$4 sm:$0xff]  }
  0x2d   :  { %v527_v14 = vld [vmem:[#allocation5 + $0x10] ss:$8 sps:$4 sm:$0xff]   ;;  %v528_v15 = vld [vmem:[#allocation5 + $0x4] ss:$8 sps:$4 sm:$0xff]   ;;  %v530_v16 = vld [vmem:[#allocation5] ss:$8 sps:$4 sm:$0xff]  }
  0x2e   :  { %186 = vmatpush1.bf16.msra.mxu0 %v512_v4  ;;  %v531_v17 = vld [vmem:[#allocation2] sm:$0xff]   ;;  %v534_v20 = vld [vmem:[#allocation7 + $0x70] sm:$0xff]   ;;  %v537_v23 = vld [vmem:[#allocation7 + $0x28] sm:$0xff]   ;;  %v88_v35 = vshrl.u32 %v87_v34, 7  ;;  %s646_s12 = smov [#allocation8]  }
  0x2f   :  { %187 = vmatprep.subr.bf16.mxu0 %v513_v5  ;;  %v532_v18 = vld [vmem:[#allocation7 + $0x78] sm:$0xff]   ;;  %v535_v21 = vld [vmem:[#allocation7 + $0x30] sm:$0xff]   ;;  %v538_v24 = vld [vmem:[#allocation7 + $0x60] sm:$0xff]   ;;  %s429_s13 = sshll.u32 %s646_s12, 4  ;;  %s430_s13 = int_to_ptr.vmem [resolvable:$true] %s429_s13 }
  0x30   :  { %v533_v19 = vld [vmem:[#allocation7 + $0x38] sm:$0xff]   ;;  %476 = vmatprep.subr.bf16.mxu1 %v532_v18  ;;  %v539_v25 = vld [vmem:[#allocation7 + $0x20] sm:$0xff]   ;;  %v542_v28 = vld [vmem:[#allocation7 + $0x50] sm:$0xff]   ;;  %v89_v36 = vsub.s32 0, %v88_v35  ;;  %v93_v38 = vsub.s32 1, %v88_v35  ;;  %s612_s14 = scalar_lea.vmem %s430_s13, 256  ;;  %p617_p2 = scmp.lt.s32.totalorder %s430_s13, %s430_s13 }
  0x31   :  { %477 = vmatpush3.bf16.msra.mxu1 %v533_v19  ;;  %v540_v26 = vld [vmem:[#allocation7 + $0x58] sm:$0xff]   ;;  %v543_v29 = vld [vmem:[#allocation7 + $0x10] sm:$0xff]   ;;  %v544_v30 = vld [vmem:[#allocation7 + $0x48] sm:$0xff]   ;;  %p613_p1 = scmp.ne.s32.totalorder %s430_s13, %s612_s14  ;;  %p618_p3 = scmp.lt.s32.totalorder %s612_s14, %s612_s14 }
  0x32   :  { %188 = vmatpush1.bf16.msra.mxu0 %v515_v6  ;;  %478 = vmatprep.subr.bf16.mxu1 %v534_v20  ;;  %v541_v27 = vld [vmem:[#allocation7 + $0x18] sm:$0xff]   ;;  %v545_v31 = vld [vmem:[#allocation7 + $0x8] sm:$0xff]   ;;  %v546_v32 = vld [vmem:[#allocation7 + $0x40] sm:$0xff]  }
  0x33   :  { %189 = vmatprep.subr.bf16.mxu0 %v516_v7  ;;  %v547_v33 = vld [vmem:[#allocation7] sm:$0xff]   ;;  %v85_v37 = vld [vmem:[%s703_s2] sm:$0x3]  ;;  %p619_p4 = por %p618_p3, %p617_p2 }
  0x34   :  { %v90_v40 = vrot.slane %v85_v37, %v89_v36  ;;  %v94_v42 = vrot.slane %v85_v37, %v93_v38  ;;  %v459_v6 = vld [vmem:[%s705_s4] ss:$0 sm:$0xff] }
  0x35   :  { %479 = vmatpush3.bf16.msra.mxu1 %v535_v21  ;;  %p620_p5 = pnand %p619_p4, %p613_p1 }
  0x36   :  { %190 = vmatpush1.bf16.msra.mxu0 %v518_v8  ;;  %480 = vmatprep.subr.bf16.mxu1 %v536_v22 }
  0x37   :  { %191 = vmatprep.subr.bf16.mxu0 %v519_v9 }
  0x39   :  { %481 = vmatpush3.bf16.msra.mxu1 %v537_v23 }
  0x3a   :  { %192 = vmatpush1.bf16.msra.mxu0 %v521_v10  ;;  %482 = vmatprep.subr.bf16.mxu1 %v538_v24 }
  0x3b   :  { %193 = vmatprep.subr.bf16.mxu0 %v522_v11 }
  0x3d   :  { %483 = vmatpush3.bf16.msra.mxu1 %v539_v25 }
  0x3e   :  { %194 = vmatpush1.bf16.msra.mxu0 %v524_v12  ;;  %484 = vmatprep.subr.bf16.mxu1 %v540_v26 }
  0x3f   :  { %195 = vmatprep.subr.bf16.mxu0 %v525_v13 }
  0x41   :  { %485 = vmatpush3.bf16.msra.mxu1 %v541_v27 }
  0x42   :  { %196 = vmatpush1.bf16.msra.mxu0 %v527_v14  ;;  %486 = vmatprep.subr.bf16.mxu1 %v542_v28 }
  0x43   :  { %197 = vmatprep.subr.bf16.mxu0 %v528_v15 }
  0x45   :  { %487 = vmatpush3.bf16.msra.mxu1 %v543_v29 }
  0x46   :  { %198 = vmatpush1.bf16.msra.mxu0 %v530_v16  ;;  %488 = vmatprep.subr.bf16.mxu1 %v544_v30 }
  0x49   :  { %216 = vmatmul.mubr.bf16.vlgmr.msra.gmra.mxu0 %v531_v17  ;;  %489 = vmatpush3.bf16.msra.mxu1 %v545_v31 }
  0x4a   :  { %490 = vmatprep.subr.bf16.mxu1 %v546_v32 }
  0x4d   :  { %491 = vmatpush3.bf16.msra.mxu1 %v547_v33 }
 0x109   :  { %v217_v39 = vpop.f32.mrf.mxu0 }
 0x10a   :  { %v218_v44 = vadd.f32 %v217_v39, %v90_v40 }
 0x10b   :  { %v219_v41 = vpop.f32.mrf.mxu0 }
 0x10c   :  { %v220_v47 = vadd.f32 %v219_v41, %v94_v42 }
 0x10d   :  { %v221_v43 = vpop.f32.mrf.mxu0 }
 0x10e   :  { %v222_v45 = vadd.f32 %v221_v43, %v90_v40 }
 0x10f   :  { %v223_v46 = vpop.f32.mrf.mxu0 }
 0x110   :  { %v226_v48 = vpack.c.bf16 %v222_v45, %v218_v44  ;;  %v224_v49 = vadd.f32 %v223_v46, %v94_v42 }
 0x112   :  { %v230_v50 = vmul.bf16 1027030327, %v226_v48  ;;  %v227_v51 = vpack.c.bf16 %v224_v49, %v220_v47  ;;  %v228_v2 = vmul.bf16 1056980736, %v226_v48 }
 0x114   :  { %v231_v52 = vmul.bf16 1027030327, %v227_v51  ;;  %v232_v53 = vmul.bf16 %v230_v50, %v226_v48  ;;  %v229_v0 = vmul.bf16 1056980736, %v227_v51 }
 0x116   :  { %v233_v54 = vmul.bf16 %v231_v52, %v227_v51  ;;  %v234_v55 = vmul.bf16 %v232_v53, %v226_v48 }
 0x118   :  { %v235_v56 = vmul.bf16 %v233_v54, %v227_v51  ;;  %v236_v57 = vadd.bf16 %v234_v55, %v226_v48 }
 0x11a   :  { %v237_v58 = vadd.bf16 %v235_v56, %v227_v51  ;;  %v238_v59 = vmul.bf16 1061961548, %v236_v57 }
 0x11c   :  { %v239_v60 = vmul.bf16 1061961548, %v237_v58  ;;  %548 = vtanh.bf16 %v238_v59 }
 0x11e   :  { %550 = vtanh.bf16 %v239_v60 }
 0x12a   :  { %v549_v61 = vpop.eup %548 }
 0x12b   :  { %v242_v63 = vadd.bf16 1065369472, %v549_v61 }
 0x12c   :  { %v551_v62 = vpop.eup %550 }
 0x12d   :  { %v243_v1 = vadd.bf16 1065369472, %v551_v62  ;;  %v244_v4 = vmul.bf16 %v242_v63, %v228_v2 }
 0x12f   :  { %v245_v3 = vmul.bf16 %v243_v1, %v229_v0 }
 0x131   :  { %413 = vmatprep.mubr.bf16.mxu1 %v245_v3 }
 0x132   :  { %414 = vmatmul.mubr.bf16.vlgmr.msra.gmra.mxu1 %v244_v4 }
 0x1f2   :  { %v492_v5 = vpop.f32.mrf.mxu1 }
 0x1f4   :  { %v493_v7 = vpop.f32.mrf.mxu1 }
 0x1f5   :  { %v494_v8 = vadd.f32 %v493_v7, %v492_v5 }
 0x1f6   :  { %v495_v9 = vpop.f32.mrf.mxu1 }
 0x1f7   :  { %v416_v10 = vadd.f32 %v494_v8, %v459_v6 }
 0x1f8   :  { %v496_v11 = vpop.f32.mrf.mxu1 }
 0x1f9   :  { %422 = vst [vmem:[#allocation8] sm:$0xff] %v416_v10  ;;  %v497_v12 = vadd.f32 %v496_v11, %v495_v9 }
 0x1fb   :  { %v419_v13 = vadd.f32 %v497_v12, %v459_v6 }
 0x1fd   :  { %423 = vst [vmem:[#allocation8 + $0x8] sm:$0xff] %v419_v13 }
 0x1fe   :  { %623 = shalt.err (!%p620_p5)
}
 0x1ff   :  { %435 = dma.vmem_to_hbm [thread:$0]  %s430_s13, 256, %s706_s5, [#allocation4], %s639_s21, %s639_s21, %s640_s22  }
 0x200   :  { %636 = dma.done.wait [#allocation4], 256  }
 0x201   :  { %637 = vsyncadd [#allocation4], 4294967040 }
 0x202   :  { %439 = vsyncpa [#allocation3], 1 }
 0x203   :  { %440 = vsyncpa [#allocation6], 1 }
 0x204   :  { %441 = vsyncpa [#allocation4], 1 }

</bundles_post_ra>
